<compile_context>
chip_gen: v7x
topology: tpu7x:2x2x1
jax: 0.10.0
libtpu: 0.0.40
codegen_flags: <defaults>
</compile_context>

<pallas_src>
import jax
import jax.numpy as jnp
import numpy as np
from jax import lax
from jax.experimental import pallas as pl
from jax.experimental.pallas import tpu as pltpu
from jax.scipy.linalg import block_diag

PLANES = (32, 64, 64)   # default planes, n_layers=1, 3 conv stages
EPS = 1e-5              # BatchNorm1d eps (training-mode batch statistics)

# --- weight-slab row layout (tied to PLANES = (32, 64, 64)), all bf16, 128 lanes ---
W1_R0, W1_R1 = 0, 256       # stage-1: block-diag x4 of tap-stacked (64,32) weight
W2H_R0, W2H_R1 = 256, 384   # stage-2 h-half: block-diag x2 of (64,64)
W2X_R0, W2X_R1 = 384, 512   # stage-2 x-half: block-diag x2 of (64,64)
W3_R0, W3_R1 = 512, 640     # stage-3: cols 0:64 = h-half (128,64), cols 64:128 = x-half
FC1_R0, FC1_R1 = 640, 704   # fc1 weight (64,64) in cols 0:64
FC2_R0, FC2_R1 = 704, 768   # fc2 weight (64,1) in col 0 (lane-padded)
W_ROWS = 768

# --- aux-slab row layout (f32, 128 lanes) ---
A1_R0 = 0       # (128,128) stat-fold matrix for stage 1 (4 groups of 32 channels)
A2_R0 = 128     # (128,128) stat-fold matrix for stage 2 (2 groups of 64 channels)
VEC = 256       # 11 bias / BN / fc vectors, one per row (rows 256..266, 267..271 pad)
P_OFF = 272     # pooling matrix rows start (appended per call)
AUX_BASE_ROWS = 272


# ---------------------------------------------------------------------------
# in-kernel helper: training-mode BatchNorm1d (+ optional packed-layout stat fold)
# ---------------------------------------------------------------------------
def _bn_relu(y, gamma, beta, fold=None):
    cm = jnp.mean(y, axis=0, keepdims=True)          # per-column mean      (1, W)
    cs = jnp.mean(y * y, axis=0, keepdims=True)      # per-column E[y^2]    (1, W)
    if fold is not None:                             # average the time-groups of each
        cm = jnp.dot(cm, fold, preferred_element_type=jnp.float32)   # channel and
        cs = jnp.dot(cs, fold, preferred_element_type=jnp.float32)   # broadcast back
    var = cs - cm * cm                               # biased batch variance
    yn = (y - cm) * lax.rsqrt(var + EPS)
    return jnp.maximum(yn * gamma + beta, 0.0)


# ---------------------------------------------------------------------------
# the Pallas kernel: whole forward pass (tiny shapes -> single VMEM block)
# ---------------------------------------------------------------------------
def resnet_fdor_kernel(x0p_ref, x1p_ref, x2p_ref, w_ref, aux_ref, out_ref):
    f32 = jnp.float32
    bf16 = jnp.bfloat16
    batch = out_ref.shape[0]
    rows3 = x2p_ref.shape[0]                         # batch * T3

    a1 = aux_ref[A1_R0:A1_R0 + 128, :]               # stat-fold matrices (f32)
    a2 = aux_ref[A2_R0:A2_R0 + 128, :]
    vecs = aux_ref[VEC:VEC + 16, :]                  # bias / BN / fc vectors

    # --- stage 1: Conv1d(32->32, k=2, s=2) + BN + ReLU, output lane-packed x4 ----
    y1 = jnp.dot(x0p_ref[...], w_ref[W1_R0:W1_R1, :], preferred_element_type=f32)
    y1 = y1 + vecs[0:1, :]                                           # conv bias
    h1 = _bn_relu(y1, vecs[1:2, :], vecs[2:3, :], fold=a1)           # (R, 128)

    # --- stage 2: channel-concat [h1 | x1] folded into split weights, packed x2 --
    y2 = (jnp.dot(h1.astype(bf16), w_ref[W2H_R0:W2H_R1, :], preferred_element_type=f32)
          + jnp.dot(x1p_ref[...], w_ref[W2X_R0:W2X_R1, :], preferred_element_type=f32))
    y2 = y2 + vecs[3:4, :]
    h2 = _bn_relu(y2, vecs[4:5, :], vecs[5:6, :], fold=a2)           # (R, 128)

    # --- stage 3: channel-concat [h2 | x2] folded into split weights -------------
    y3 = (jnp.dot(h2.astype(bf16), w_ref[W3_R0:W3_R1, 0:64], preferred_element_type=f32)
          + jnp.dot(x2p_ref[...], w_ref[W3_R0:W3_R1, 64:128], preferred_element_type=f32))
    y3 = y3 + vecs[6:7, 0:64]
    h3 = _bn_relu(y3, vecs[7:8, 0:64], vecs[8:9, 0:64])              # (R, 64)

    # --- global mean-pool over time: host-precomputed pooling matrix -------------
    pooled = jnp.dot(aux_ref[P_OFF:P_OFF + batch, 0:rows3], h3,
                     preferred_element_type=f32)                     # (B, 64)

    # --- MLP head: Linear(64,64)+ReLU (n_layers=1), then Linear(64,1) ------------
    z = jnp.maximum(
        jnp.dot(pooled.astype(bf16), w_ref[FC1_R0:FC1_R1, 0:64],
                preferred_element_type=f32) + vecs[9:10, 0:64], 0.0)
    pred = (jnp.dot(z.astype(bf16), w_ref[FC2_R0:FC2_R1, :],
                    preferred_element_type=f32) + vecs[10:11, :])    # (B, 128), col 0 real
    out_ref[...] = pred


# ---------------------------------------------------------------------------
# parameter init (deterministic, PyTorch-default-like uniform init)
# ---------------------------------------------------------------------------
def init_params(key):
    conv_shapes = [(PLANES[0], PLANES[0]),        # conv1: (Cout, Cin)
                   (PLANES[1], PLANES[0] * 2),    # conv2
                   (PLANES[2], PLANES[1] * 2)]    # conv3
    keys = jax.random.split(key, 16)
    ki = 0
    raw = {}
    for idx, (cout, cin) in enumerate(conv_shapes, start=1):
        bound = 1.0 / np.sqrt(cin * 2)
        raw[f"w{idx}"] = jax.random.uniform(keys[ki], (cout, cin, 2), jnp.float32,
                                            -bound, bound); ki += 1
        raw[f"b{idx}"] = jax.random.uniform(keys[ki], (cout,), jnp.float32,
                                            -bound, bound); ki += 1
        raw[f"g{idx}"] = jnp.ones((cout,), jnp.float32)    # BN weight
        raw[f"be{idx}"] = jnp.zeros((cout,), jnp.float32)  # BN bias
    c = PLANES[-1]
    bound = 1.0 / np.sqrt(c)
    raw["fcw1"] = jax.random.uniform(keys[ki], (c, c), jnp.float32, -bound, bound); ki += 1
    raw["fcb1"] = jax.random.uniform(keys[ki], (c,), jnp.float32, -bound, bound); ki += 1
    raw["fcw2"] = jax.random.uniform(keys[ki], (1, c), jnp.float32, -bound, bound); ki += 1
    raw["fcb2"] = jax.random.uniform(keys[ki], (1,), jnp.float32, -bound, bound); ki += 1
    return raw


# ---------------------------------------------------------------------------
# host-side packing: weights -> bf16 slab + f32 aux slab (done once at init)
# ---------------------------------------------------------------------------
def pack_params(raw):
    c0, c1, c2 = PLANES

    def tap_stack(w, lo, hi):
        # rows = k*Cin + c (k = conv tap), cols = out-channel
        return jnp.concatenate([w[:, lo:hi, 0].T, w[:, lo:hi, 1].T], axis=0)

    w1_tap = tap_stack(raw["w1"], 0, c0)            # (64, 32)
    w2h_tap = tap_stack(raw["w2"], 0, c0)           # (64, 64)
    w2x_tap = tap_stack(raw["w2"], c0, 2 * c0)      # (64, 64)
    w3h = tap_stack(raw["w3"], 0, c1)               # (128, 64)
    w3x = tap_stack(raw["w3"], c1, 2 * c1)          # (128, 64)

    w_slab = jnp.zeros((W_ROWS, 128), jnp.float32)
    w_slab = w_slab.at[W1_R0:W1_R1, :].set(block_diag(w1_tap, w1_tap, w1_tap, w1_tap))
    w_slab = w_slab.at[W2H_R0:W2H_R1, :].set(block_diag(w2h_tap, w2h_tap))
    w_slab = w_slab.at[W2X_R0:W2X_R1, :].set(block_diag(w2x_tap, w2x_tap))
    w_slab = w_slab.at[W3_R0:W3_R1, 0:c2].set(w3h)
    w_slab = w_slab.at[W3_R0:W3_R1, c2:128].set(w3x)
    w_slab = w_slab.at[FC1_R0:FC1_R1, 0:c2].set(raw["fcw1"].T)
    w_slab = w_slab.at[FC2_R0:FC2_R1, 0:1].set(raw["fcw2"].T)
    w_slab = w_slab.astype(jnp.bfloat16)

    # stat-fold matrices: average the G column-groups of each channel & broadcast back
    idx = jnp.arange(128)
    a1 = (idx[:, None] % c0 == idx[None, :] % c0).astype(jnp.float32) / 4.0
    a2 = (idx[:, None] % c1 == idx[None, :] % c1).astype(jnp.float32) / 2.0

    aux = jnp.zeros((AUX_BASE_ROWS, 128), jnp.float32)
    aux = aux.at[A1_R0:A1_R0 + 128, :].set(a1)
    aux = aux.at[A2_R0:A2_R0 + 128, :].set(a2)
    aux = aux.at[VEC + 0, :].set(jnp.tile(raw["b1"], 4))
    aux = aux.at[VEC + 1, :].set(jnp.tile(raw["g1"], 4))
    aux = aux.at[VEC + 2, :].set(jnp.tile(raw["be1"], 4))
    aux = aux.at[VEC + 3, :].set(jnp.tile(raw["b2"], 2))
    aux = aux.at[VEC + 4, :].set(jnp.tile(raw["g2"], 2))
    aux = aux.at[VEC + 5, :].set(jnp.tile(raw["be2"], 2))
    aux = aux.at[VEC + 6, 0:c2].set(raw["b3"])
    aux = aux.at[VEC + 7, 0:c2].set(raw["g3"])
    aux = aux.at[VEC + 8, 0:c2].set(raw["be3"])
    aux = aux.at[VEC + 9, 0:c2].set(raw["fcb1"])
    aux = aux.at[VEC + 10, :].set(raw["fcb2"][0])
    return w_slab, aux


# ---------------------------------------------------------------------------
# host-side activation packing (im2col over the time axis, lane-dense layout)
# ---------------------------------------------------------------------------
def _pack_x0(x):   # (B, C, T0) -> (B*T3, 8C); time index = 8u + 2q + k
    b, c, t0 = x.shape
    t3 = t0 // 8
    xr = x.reshape(b, c, t3, 4, 2)
    xr = jnp.transpose(xr, (0, 2, 3, 4, 1))     # [b, u, q, k, c]
    return xr.reshape(b * t3, 8 * c)


def _pack_x1(x):   # (B, C, T1) -> (B*T3, 4C); time index = 4u + 2e + k
    b, c, t1 = x.shape
    t3 = t1 // 4
    xr = x.reshape(b, c, t3, 2, 2)
    xr = jnp.transpose(xr, (0, 2, 3, 4, 1))     # [b, u, e, k, c]
    return xr.reshape(b * t3, 4 * c)


def _pack_x2(x):   # (B, C, T2) -> (B*T3, 2C); time index = 2u + k
    b, c, t2 = x.shape
    t3 = t2 // 2
    xr = x.reshape(b, c, t3, 2)
    xr = jnp.transpose(xr, (0, 2, 3, 1))        # [b, u, k, c]
    return xr.reshape(b * t3, 2 * c)


def resnet_fdor_forward(mid_feature, w_slab, aux_base):
    x0, x1, x2 = mid_feature
    batch, _, l0 = x0.shape
    assert l0 % 8 == 0, "three stride-2 convs need length divisible by 8"
    t3 = l0 // 8
    rows3 = batch * t3
    # TODO(synk): for large batch*length, tile the row axis with a grid + two-pass BN
    # (and switch the pool to reshape+mean); at these shapes one VMEM block suffices.
    assert rows3 <= 128

    x0p = _pack_x0(x0).astype(jnp.bfloat16)
    x1p = _pack_x1(x1).astype(jnp.bfloat16)
    x2p = _pack_x2(x2).astype(jnp.bfloat16)

    # host-built pooling matrix (mean over the t3 time rows of each batch element)
    bi = jnp.arange(batch)[:, None]
    rj = jnp.arange(rows3)[None, :]
    pool = jnp.where(rj // t3 == bi, 1.0 / t3, 0.0).astype(jnp.float32)
    pool_rows = jnp.zeros((batch, 128), jnp.float32).at[:, :rows3].set(pool)
    aux = jnp.concatenate([aux_base, pool_rows], axis=0)

    vmem = pl.BlockSpec(memory_space=pltpu.MemorySpace.VMEM)
    out = pl.pallas_call(
        resnet_fdor_kernel,
        out_shape=jax.ShapeDtypeStruct((batch, 128), jnp.float32),   # lane-dense store
        in_specs=[vmem] * 5,
        out_specs=vmem,
    )(x0p, x1p, x2p, w_slab, aux)
    return out[:, :1]


# ---------------------------------------------------------------------------
# pure-JAX reference (same interpretation) for a correctness check
# ---------------------------------------------------------------------------
def reference_forward(mid_feature, raw):
    def conv_bn_relu(x, w, b, g, be):
        bt, c, l = x.shape
        xr = x.reshape(bt, c, l // 2, 2)
        y = jnp.einsum("ock,bctk->bot", w, xr,
                       precision=lax.Precision.HIGHEST) + b[None, :, None]
        mean = jnp.mean(y, axis=(0, 2), keepdims=True)
        var = jnp.mean(jnp.square(y - mean), axis=(0, 2), keepdims=True)
        yn = (y - mean) / jnp.sqrt(var + EPS)
        return jnp.maximum(yn * g[None, :, None] + be[None, :, None], 0.0)

    x0, x1, x2 = mid_feature
    h = conv_bn_relu(x0, raw["w1"], raw["b1"], raw["g1"], raw["be1"])
    h = conv_bn_relu(jnp.concatenate([h, x1], axis=1),
                     raw["w2"], raw["b2"], raw["g2"], raw["be2"])
    h = conv_bn_relu(jnp.concatenate([h, x2], axis=1),
                     raw["w3"], raw["b3"], raw["g3"], raw["be3"])
    pooled = jnp.mean(h, axis=-1)                                    # (B, C)
    z = jnp.maximum(pooled @ raw["fcw1"].T + raw["fcb1"], 0.0)
    return z @ raw["fcw2"].T + raw["fcb2"]


if __name__ == "__main__":
    key = jax.random.PRNGKey(0)
    kp, k0, k1, k2 = jax.random.split(key, 4)
    raw = init_params(kp)
    w_slab, aux_base = pack_params(raw)

    B, L0 = 4, 64
    mid_feature = [
        jax.random.normal(k0, (B, PLANES[0], L0), jnp.float32),       # (4, 32, 64)
        jax.random.normal(k1, (B, PLANES[0], L0 // 2), jnp.float32),  # (4, 32, 32)
        jax.random.normal(k2, (B, PLANES[1], L0 // 4), jnp.float32),  # (4, 64, 16)
    ]

    out = jax.block_until_ready(resnet_fdor_forward(mid_feature, w_slab, aux_base))
    ref = jax.block_until_ready(reference_forward(mid_feature, raw))
    # bf16 MXU matmuls vs f32 reference across 3 batch-stat BN stages -> 5e-2 tol.
    np.testing.assert_allclose(np.asarray(out), np.asarray(ref), rtol=5e-2, atol=5e-2)
    print("KERNEL_OK")
</pallas_src>

<mosaic_0001>
module attributes {stable_mosaic.version = 11 : i64} {
  func.func @resnet_fdor_kernel(%arg0: memref<32x256xbf16, #tpu.memory_space<vmem>>, %arg1: memref<32x128xbf16, #tpu.memory_space<vmem>>, %arg2: memref<32x128xbf16, #tpu.memory_space<vmem>>, %arg3: memref<768x128xbf16, #tpu.memory_space<vmem>>, %arg4: memref<276x128xf32, #tpu.memory_space<vmem>>, %arg5: memref<4x128xf32, #tpu.memory_space<vmem>>) attributes {dimension_semantics = [], scalar_prefetch = 0 : i64, scratch_operands = 0 : i64, tpu.core_type = #tpu.core_type<tc>} {
    %c0 = arith.constant 0 : index
    %c0_0 = arith.constant 0 : index
    %0 = vector.load %arg4[%c0, %c0_0] : memref<276x128xf32, #tpu.memory_space<vmem>>, vector<128x128xf32>
    %c128 = arith.constant 128 : index
    %c0_1 = arith.constant 0 : index
    %1 = vector.load %arg4[%c128, %c0_1] : memref<276x128xf32, #tpu.memory_space<vmem>>, vector<128x128xf32>
    %c256 = arith.constant 256 : index
    %c0_2 = arith.constant 0 : index
    %2 = vector.load %arg4[%c256, %c0_2] : memref<276x128xf32, #tpu.memory_space<vmem>>, vector<16x128xf32>
    %c0_3 = arith.constant 0 : index
    %c0_4 = arith.constant 0 : index
    %3 = vector.load %arg0[%c0_3, %c0_4] : memref<32x256xbf16, #tpu.memory_space<vmem>>, vector<32x256xbf16>
    %c0_5 = arith.constant 0 : index
    %c0_6 = arith.constant 0 : index
    %4 = vector.load %arg3[%c0_5, %c0_6] : memref<768x128xbf16, #tpu.memory_space<vmem>>, vector<256x128xbf16>
    %cst = arith.constant dense<0.000000e+00> : vector<32x128xf32>
    %5 = tpu.matmul %3, %4, %cst {dimension_numbers = #tpu.dot_dimension_numbers<[1], [0], [0], [1], [0, 0, 1, 1], [], []>} : vector<32x256xbf16>, vector<256x128xbf16>, vector<32x128xf32> -> vector<32x128xf32>
    %6 = vector.extract_strided_slice %2 {offsets = [0, 0], sizes = [1, 128], strides = [1, 1]} : vector<16x128xf32> to vector<1x128xf32>
    %7 = vector.broadcast %6 : vector<1x128xf32> to vector<32x128xf32>
    %8 = arith.addf %5, %7 : vector<32x128xf32>
    %9 = vector.extract_strided_slice %2 {offsets = [1, 0], sizes = [1, 128], strides = [1, 1]} : vector<16x128xf32> to vector<1x128xf32>
    %10 = vector.extract_strided_slice %2 {offsets = [2, 0], sizes = [1, 128], strides = [1, 1]} : vector<16x128xf32> to vector<1x128xf32>
    %cst_7 = arith.constant dense<0.000000e+00> : vector<128xf32>
    %11 = vector.multi_reduction <add>, %8, %cst_7 [0] : vector<32x128xf32> to vector<128xf32>
    %12 = vector.shape_cast %11 : vector<128xf32> to vector<1x128xf32>
    %cst_8 = arith.constant 3.200000e+01 : f32
    %13 = vector.broadcast %cst_8 : f32 to vector<1x128xf32>
    %14 = arith.divf %12, %13 : vector<1x128xf32>
    %15 = arith.mulf %8, %8 : vector<32x128xf32>
    %cst_9 = arith.constant dense<0.000000e+00> : vector<128xf32>
    %16 = vector.multi_reduction <add>, %15, %cst_9 [0] : vector<32x128xf32> to vector<128xf32>
    %17 = vector.shape_cast %16 : vector<128xf32> to vector<1x128xf32>
    %cst_10 = arith.constant 3.200000e+01 : f32
    %18 = vector.broadcast %cst_10 : f32 to vector<1x128xf32>
    %19 = arith.divf %17, %18 : vector<1x128xf32>
    %cst_11 = arith.constant dense<0.000000e+00> : vector<1x128xf32>
    %20 = tpu.matmul %14, %0, %cst_11 {dimension_numbers = #tpu.dot_dimension_numbers<[1], [0], [0], [1], [0, 0, 1, 1], [], []>} : vector<1x128xf32>, vector<128x128xf32>, vector<1x128xf32> -> vector<1x128xf32>
    %cst_12 = arith.constant dense<0.000000e+00> : vector<1x128xf32>
    %21 = tpu.matmul %19, %0, %cst_12 {dimension_numbers = #tpu.dot_dimension_numbers<[1], [0], [0], [1], [0, 0, 1, 1], [], []>} : vector<1x128xf32>, vector<128x128xf32>, vector<1x128xf32> -> vector<1x128xf32>
    %22 = arith.mulf %20, %20 : vector<1x128xf32>
    %23 = arith.subf %21, %22 : vector<1x128xf32>
    %24 = vector.broadcast %20 : vector<1x128xf32> to vector<32x128xf32>
    %25 = arith.subf %8, %24 : vector<32x128xf32>
    %cst_13 = arith.constant 9.99999974E-6 : f32
    %26 = vector.broadcast %cst_13 : f32 to vector<1x128xf32>
    %27 = arith.addf %23, %26 : vector<1x128xf32>
    %28 = math.rsqrt %27 : vector<1x128xf32>
    %29 = vector.broadcast %28 : vector<1x128xf32> to vector<32x128xf32>
    %30 = arith.mulf %25, %29 : vector<32x128xf32>
    %31 = vector.broadcast %9 : vector<1x128xf32> to vector<32x128xf32>
    %32 = arith.mulf %30, %31 : vector<32x128xf32>
    %33 = vector.broadcast %10 : vector<1x128xf32> to vector<32x128xf32>
    %34 = arith.addf %32, %33 : vector<32x128xf32>
    %cst_14 = arith.constant 0.000000e+00 : f32
    %35 = vector.broadcast %cst_14 : f32 to vector<32x128xf32>
    %36 = arith.maximumf %34, %35 : vector<32x128xf32>
    %37 = arith.truncf %36 : vector<32x128xf32> to vector<32x128xbf16>
    %c256_15 = arith.constant 256 : index
    %c0_16 = arith.constant 0 : index
    %38 = vector.load %arg3[%c256_15, %c0_16] : memref<768x128xbf16, #tpu.memory_space<vmem>>, vector<128x128xbf16>
    %cst_17 = arith.constant dense<0.000000e+00> : vector<32x128xf32>
    %39 = tpu.matmul %37, %38, %cst_17 {dimension_numbers = #tpu.dot_dimension_numbers<[1], [0], [0], [1], [0, 0, 1, 1], [], []>} : vector<32x128xbf16>, vector<128x128xbf16>, vector<32x128xf32> -> vector<32x128xf32>
    %c0_18 = arith.constant 0 : index
    %c0_19 = arith.constant 0 : index
    %40 = vector.load %arg1[%c0_18, %c0_19] : memref<32x128xbf16, #tpu.memory_space<vmem>>, vector<32x128xbf16>
    %c384 = arith.constant 384 : index
    %c0_20 = arith.constant 0 : index
    %41 = vector.load %arg3[%c384, %c0_20] : memref<768x128xbf16, #tpu.memory_space<vmem>>, vector<128x128xbf16>
    %cst_21 = arith.constant dense<0.000000e+00> : vector<32x128xf32>
    %42 = tpu.matmul %40, %41, %cst_21 {dimension_numbers = #tpu.dot_dimension_numbers<[1], [0], [0], [1], [0, 0, 1, 1], [], []>} : vector<32x128xbf16>, vector<128x128xbf16>, vector<32x128xf32> -> vector<32x128xf32>
    %43 = arith.addf %39, %42 : vector<32x128xf32>
    %44 = vector.extract_strided_slice %2 {offsets = [3, 0], sizes = [1, 128], strides = [1, 1]} : vector<16x128xf32> to vector<1x128xf32>
    %45 = vector.broadcast %44 : vector<1x128xf32> to vector<32x128xf32>
    %46 = arith.addf %43, %45 : vector<32x128xf32>
    %47 = vector.extract_strided_slice %2 {offsets = [4, 0], sizes = [1, 128], strides = [1, 1]} : vector<16x128xf32> to vector<1x128xf32>
    %48 = vector.extract_strided_slice %2 {offsets = [5, 0], sizes = [1, 128], strides = [1, 1]} : vector<16x128xf32> to vector<1x128xf32>
    %cst_22 = arith.constant dense<0.000000e+00> : vector<128xf32>
    %49 = vector.multi_reduction <add>, %46, %cst_22 [0] : vector<32x128xf32> to vector<128xf32>
    %50 = vector.shape_cast %49 : vector<128xf32> to vector<1x128xf32>
    %cst_23 = arith.constant 3.200000e+01 : f32
    %51 = vector.broadcast %cst_23 : f32 to vector<1x128xf32>
    %52 = arith.divf %50, %51 : vector<1x128xf32>
    %53 = arith.mulf %46, %46 : vector<32x128xf32>
    %cst_24 = arith.constant dense<0.000000e+00> : vector<128xf32>
    %54 = vector.multi_reduction <add>, %53, %cst_24 [0] : vector<32x128xf32> to vector<128xf32>
    %55 = vector.shape_cast %54 : vector<128xf32> to vector<1x128xf32>
    %cst_25 = arith.constant 3.200000e+01 : f32
    %56 = vector.broadcast %cst_25 : f32 to vector<1x128xf32>
    %57 = arith.divf %55, %56 : vector<1x128xf32>
    %cst_26 = arith.constant dense<0.000000e+00> : vector<1x128xf32>
    %58 = tpu.matmul %52, %1, %cst_26 {dimension_numbers = #tpu.dot_dimension_numbers<[1], [0], [0], [1], [0, 0, 1, 1], [], []>} : vector<1x128xf32>, vector<128x128xf32>, vector<1x128xf32> -> vector<1x128xf32>
    %cst_27 = arith.constant dense<0.000000e+00> : vector<1x128xf32>
    %59 = tpu.matmul %57, %1, %cst_27 {dimension_numbers = #tpu.dot_dimension_numbers<[1], [0], [0], [1], [0, 0, 1, 1], [], []>} : vector<1x128xf32>, vector<128x128xf32>, vector<1x128xf32> -> vector<1x128xf32>
    %60 = arith.mulf %58, %58 : vector<1x128xf32>
    %61 = arith.subf %59, %60 : vector<1x128xf32>
    %62 = vector.broadcast %58 : vector<1x128xf32> to vector<32x128xf32>
    %63 = arith.subf %46, %62 : vector<32x128xf32>
    %cst_28 = arith.constant 9.99999974E-6 : f32
    %64 = vector.broadcast %cst_28 : f32 to vector<1x128xf32>
    %65 = arith.addf %61, %64 : vector<1x128xf32>
    %66 = math.rsqrt %65 : vector<1x128xf32>
    %67 = vector.broadcast %66 : vector<1x128xf32> to vector<32x128xf32>
    %68 = arith.mulf %63, %67 : vector<32x128xf32>
    %69 = vector.broadcast %47 : vector<1x128xf32> to vector<32x128xf32>
    %70 = arith.mulf %68, %69 : vector<32x128xf32>
    %71 = vector.broadcast %48 : vector<1x128xf32> to vector<32x128xf32>
    %72 = arith.addf %70, %71 : vector<32x128xf32>
    %cst_29 = arith.constant 0.000000e+00 : f32
    %73 = vector.broadcast %cst_29 : f32 to vector<32x128xf32>
    %74 = arith.maximumf %72, %73 : vector<32x128xf32>
    %75 = arith.truncf %74 : vector<32x128xf32> to vector<32x128xbf16>
    %c512 = arith.constant 512 : index
    %c0_30 = arith.constant 0 : index
    %76 = vector.load %arg3[%c512, %c0_30] : memref<768x128xbf16, #tpu.memory_space<vmem>>, vector<128x64xbf16>
    %cst_31 = arith.constant dense<0.000000e+00> : vector<32x64xf32>
    %77 = tpu.matmul %75, %76, %cst_31 {dimension_numbers = #tpu.dot_dimension_numbers<[1], [0], [0], [1], [0, 0, 1, 1], [], []>} : vector<32x128xbf16>, vector<128x64xbf16>, vector<32x64xf32> -> vector<32x64xf32>
    %c0_32 = arith.constant 0 : index
    %c0_33 = arith.constant 0 : index
    %78 = vector.load %arg2[%c0_32, %c0_33] : memref<32x128xbf16, #tpu.memory_space<vmem>>, vector<32x128xbf16>
    %c512_34 = arith.constant 512 : index
    %c64 = arith.constant 64 : index
    %79 = vector.load %arg3[%c512_34, %c64] : memref<768x128xbf16, #tpu.memory_space<vmem>>, vector<128x64xbf16>
    %cst_35 = arith.constant dense<0.000000e+00> : vector<32x64xf32>
    %80 = tpu.matmul %78, %79, %cst_35 {dimension_numbers = #tpu.dot_dimension_numbers<[1], [0], [0], [1], [0, 0, 1, 1], [], []>} : vector<32x128xbf16>, vector<128x64xbf16>, vector<32x64xf32> -> vector<32x64xf32>
    %81 = arith.addf %77, %80 : vector<32x64xf32>
    %82 = vector.extract_strided_slice %2 {offsets = [6, 0], sizes = [1, 64], strides = [1, 1]} : vector<16x128xf32> to vector<1x64xf32>
    %83 = vector.broadcast %82 : vector<1x64xf32> to vector<32x64xf32>
    %84 = arith.addf %81, %83 : vector<32x64xf32>
    %85 = vector.extract_strided_slice %2 {offsets = [7, 0], sizes = [1, 64], strides = [1, 1]} : vector<16x128xf32> to vector<1x64xf32>
    %86 = vector.extract_strided_slice %2 {offsets = [8, 0], sizes = [1, 64], strides = [1, 1]} : vector<16x128xf32> to vector<1x64xf32>
    %cst_36 = arith.constant dense<0.000000e+00> : vector<64xf32>
    %87 = vector.multi_reduction <add>, %84, %cst_36 [0] : vector<32x64xf32> to vector<64xf32>
    %88 = vector.shape_cast %87 : vector<64xf32> to vector<1x64xf32>
    %cst_37 = arith.constant 3.200000e+01 : f32
    %89 = vector.broadcast %cst_37 : f32 to vector<1x64xf32>
    %90 = arith.divf %88, %89 : vector<1x64xf32>
    %91 = arith.mulf %84, %84 : vector<32x64xf32>
    %cst_38 = arith.constant dense<0.000000e+00> : vector<64xf32>
    %92 = vector.multi_reduction <add>, %91, %cst_38 [0] : vector<32x64xf32> to vector<64xf32>
    %93 = vector.shape_cast %92 : vector<64xf32> to vector<1x64xf32>
    %cst_39 = arith.constant 3.200000e+01 : f32
    %94 = vector.broadcast %cst_39 : f32 to vector<1x64xf32>
    %95 = arith.divf %93, %94 : vector<1x64xf32>
    %96 = arith.mulf %90, %90 : vector<1x64xf32>
    %97 = arith.subf %95, %96 : vector<1x64xf32>
    %98 = vector.broadcast %90 : vector<1x64xf32> to vector<32x64xf32>
    %99 = arith.subf %84, %98 : vector<32x64xf32>
    %cst_40 = arith.constant 9.99999974E-6 : f32
    %100 = vector.broadcast %cst_40 : f32 to vector<1x64xf32>
    %101 = arith.addf %97, %100 : vector<1x64xf32>
    %102 = math.rsqrt %101 : vector<1x64xf32>
    %103 = vector.broadcast %102 : vector<1x64xf32> to vector<32x64xf32>
    %104 = arith.mulf %99, %103 : vector<32x64xf32>
    %105 = vector.broadcast %85 : vector<1x64xf32> to vector<32x64xf32>
    %106 = arith.mulf %104, %105 : vector<32x64xf32>
    %107 = vector.broadcast %86 : vector<1x64xf32> to vector<32x64xf32>
    %108 = arith.addf %106, %107 : vector<32x64xf32>
    %cst_41 = arith.constant 0.000000e+00 : f32
    %109 = vector.broadcast %cst_41 : f32 to vector<32x64xf32>
    %110 = arith.maximumf %108, %109 : vector<32x64xf32>
    %c272 = arith.constant 272 : index
    %c0_42 = arith.constant 0 : index
    %111 = vector.load %arg4[%c272, %c0_42] : memref<276x128xf32, #tpu.memory_space<vmem>>, vector<4x32xf32>
    %cst_43 = arith.constant dense<0.000000e+00> : vector<4x64xf32>
    %112 = tpu.matmul %111, %110, %cst_43 {dimension_numbers = #tpu.dot_dimension_numbers<[1], [0], [0], [1], [0, 0, 1, 1], [], []>} : vector<4x32xf32>, vector<32x64xf32>, vector<4x64xf32> -> vector<4x64xf32>
    %113 = arith.truncf %112 : vector<4x64xf32> to vector<4x64xbf16>
    %c640 = arith.constant 640 : index
    %c0_44 = arith.constant 0 : index
    %114 = vector.load %arg3[%c640, %c0_44] : memref<768x128xbf16, #tpu.memory_space<vmem>>, vector<64x64xbf16>
    %cst_45 = arith.constant dense<0.000000e+00> : vector<4x64xf32>
    %115 = tpu.matmul %113, %114, %cst_45 {dimension_numbers = #tpu.dot_dimension_numbers<[1], [0], [0], [1], [0, 0, 1, 1], [], []>} : vector<4x64xbf16>, vector<64x64xbf16>, vector<4x64xf32> -> vector<4x64xf32>
    %116 = vector.extract_strided_slice %2 {offsets = [9, 0], sizes = [1, 64], strides = [1, 1]} : vector<16x128xf32> to vector<1x64xf32>
    %117 = vector.broadcast %116 : vector<1x64xf32> to vector<4x64xf32>
    %118 = arith.addf %115, %117 : vector<4x64xf32>
    %cst_46 = arith.constant 0.000000e+00 : f32
    %119 = vector.broadcast %cst_46 : f32 to vector<4x64xf32>
    %120 = arith.maximumf %118, %119 : vector<4x64xf32>
    %121 = arith.truncf %120 : vector<4x64xf32> to vector<4x64xbf16>
    %c704 = arith.constant 704 : index
    %c0_47 = arith.constant 0 : index
    %122 = vector.load %arg3[%c704, %c0_47] : memref<768x128xbf16, #tpu.memory_space<vmem>>, vector<64x128xbf16>
    %cst_48 = arith.constant dense<0.000000e+00> : vector<4x128xf32>
    %123 = tpu.matmul %121, %122, %cst_48 {dimension_numbers = #tpu.dot_dimension_numbers<[1], [0], [0], [1], [0, 0, 1, 1], [], []>} : vector<4x64xbf16>, vector<64x128xbf16>, vector<4x128xf32> -> vector<4x128xf32>
    %124 = vector.extract_strided_slice %2 {offsets = [10, 0], sizes = [1, 128], strides = [1, 1]} : vector<16x128xf32> to vector<1x128xf32>
    %125 = vector.broadcast %124 : vector<1x128xf32> to vector<4x128xf32>
    %126 = arith.addf %123, %125 : vector<4x128xf32>
    %c0_49 = arith.constant 0 : index
    %c0_50 = arith.constant 0 : index
    %127 = vector.load %arg5[%c0_49, %c0_50] : memref<4x128xf32, #tpu.memory_space<vmem>>, vector<4x128xf32>
    tpu.vector_store %arg5[%c0_49, %c0_50], %126 {strides = array<i32>} : memref<4x128xf32, #tpu.memory_space<vmem>>, vector<4x128xf32>,
    return
  }
}

</mosaic_0001>

<bundles_post_ra>
// kernel: tpu_custom_call.1
= control target key start
LH: loop header
LB: loop body
LE: loop exit
PB: predicated region body
PF: predicated region fallthrough
CT: control target
= control target key end

     0   :  { %10 = vsyncpa [#allocation3], 0  ;;  %s2673_s0 = inlined_call_operand.hbm [shape: bf16[32,256], index: 0, kind: input, shape index: {}]   ;;  %s2674_s1 = inlined_call_operand.hbm [shape: bf16[32,128], index: 1, kind: input, shape index: {}]   ;;  %s2675_s2 = inlined_call_operand.hbm [shape: bf16[32,128], index: 2, kind: input, shape index: {}]   ;;  %s2676_s3 = inlined_call_operand.hbm [shape: bf16[768,128], index: 3, kind: input, shape index: {}]   ;;  %s2677_s4 = inlined_call_operand.hbm [shape: f32[276,128], index: 4, kind: input, shape index: {}]   ;;  %s2678_s5 = inlined_call_operand.hbm [shape: f32[4,128], index: 5, kind: output, shape index: {}]  }
   0x1   :  { %11 = vsyncpa [#allocation6], 0 }
   0x2   :  { %12 = vsyncpa [#allocation9], 0 }
   0x3   :  { %13 = vsyncpa [#allocation4], 0  ;;  %s2313_s18 = smov [#allocation5]   ;;  %s2173_s22 = scalar_lea.hbm %s2674_s1, 256 }
   0x4   :  { %s31_s19 = sshll.u32 %s2313_s18, 4  ;;  %p2174_p0 = scmp.ne.s32.totalorder %s2674_s1, %s2173_s22  ;;  %s32_s19 = int_to_ptr.vmem [resolvable:$true] %s31_s19 }
   0x5   :  { %p2177_p1 = scmp.lt.u32.totalorder %s2173_s22, %s2674_s1 }
   0x7   :  { %p2179_p2 = pnand %p2177_p1, %p2174_p0 }
   0x9   :  { %2182 = shalt.err (!%p2179_p2)
}
   0xa   :  { %s2183_s27 = scalar_lea.vmem %s32_s19, 256  ;;  %p2188_p4 = scmp.lt.s32.totalorder %s32_s19, %s32_s19 }
   0xb   :  { %p2184_p3 = scmp.ne.s32.totalorder %s32_s19, %s2183_s27  ;;  %p2189_p5 = scmp.lt.s32.totalorder %s2183_s27, %s2183_s27 }
   0xd   :  { %p2190_p6 = por %p2189_p5, %p2188_p4 }
   0xf   :  { %p2191_p7 = pnand %p2190_p6, %p2184_p3 }
  0x11   :  { %2194 = shalt.err (!%p2191_p7)
}
  0x12   :  { %s2314_s28 = smov 64   ;;  %s2315_s29 = smov 4  }
  0x13   :  { %37 = dma.hbm_to_vmem [thread:$0]  %s2674_s1, 256, %s32_s19, [#allocation6], %s2314_s28, %s2314_s28, %s2315_s29  }
  0x14   :  { %s2316_s7 = smov [#allocation8]   ;;  %s2317_s9 = smov [#allocation2]  }
  0x15   :  { %s55_s8 = sshll.u32 %s2316_s7, 4  ;;  %s19_s10 = sshll.u32 %s2317_s9, 4  ;;  %s56_s8 = int_to_ptr.vmem [resolvable:$true] %s55_s8  ;;  %s20_s10 = int_to_ptr.vmem [resolvable:$true] %s19_s10 }
  0x16   :  { %s2195_s13 = scalar_lea.hbm %s2676_s3, 6144 }
  0x17   :  { %p2196_p8 = scmp.ne.s32.totalorder %s2676_s3, %s2195_s13  ;;  %p2199_p9 = scmp.lt.u32.totalorder %s2195_s13, %s2676_s3 }
  0x19   :  { %p2201_p10 = pnand %p2199_p9, %p2196_p8 }
  0x1b   :  { %2204 = shalt.err (!%p2201_p10)
}
  0x1c   :  { %s2205_s1 = scalar_lea.vmem %s56_s8, 6144  ;;  %p2210_p12 = scmp.lt.s32.totalorder %s56_s8, %s56_s8 }
  0x1d   :  { %p2206_p11 = scmp.ne.s32.totalorder %s56_s8, %s2205_s1  ;;  %p2211_p13 = scmp.lt.s32.totalorder %s2205_s1, %s2205_s1 }
  0x1f   :  { %p2212_p0 = por %p2211_p13, %p2210_p12 }
  0x21   :  { %p2213_p1 = pnand %p2212_p0, %p2206_p11 }
  0x23   :  { %2216 = shalt.err (!%p2213_p1)
}
  0x24   :  { %61 = dma.hbm_to_vmem [thread:$0]  %s2676_s3, 6144, %s56_s8, [#allocation9], %s2314_s28, %s2314_s28, %s2315_s29  }
  0x25   :  { %s2217_s22 = scalar_lea.hbm %s2673_s0, 512 }
  0x26   :  { %p2218_p2 = scmp.ne.s32.totalorder %s2673_s0, %s2217_s22  ;;  %p2221_p3 = scmp.lt.u32.totalorder %s2217_s22, %s2673_s0 }
  0x28   :  { %p2223_p4 = pnand %p2221_p3, %p2218_p2 }
  0x2a   :  { %2226 = shalt.err (!%p2223_p4)
}
  0x2b   :  { %s2227_s27 = scalar_lea.vmem %s20_s10, 512  ;;  %p2232_p6 = scmp.lt.s32.totalorder %s20_s10, %s20_s10 }
  0x2c   :  { %p2228_p5 = scmp.ne.s32.totalorder %s20_s10, %s2227_s27  ;;  %p2233_p7 = scmp.lt.s32.totalorder %s2227_s27, %s2227_s27 }
  0x2e   :  { %p2234_p8 = por %p2233_p7, %p2232_p6 }
  0x30   :  { %p2235_p9 = pnand %p2234_p8, %p2228_p5 }
  0x32   :  { %2238 = shalt.err (!%p2235_p9)
}
  0x33   :  { %s2318_s3 = smov 128   ;;  %s2319_s30 = smov 8  }
  0x34   :  { %25 = dma.hbm_to_vmem [thread:$0]  %s2673_s0, 512, %s20_s10, [#allocation3], %s2318_s3, %s2318_s3, %s2319_s30  }
  0x35   :  { %s2320_s8 = smov [#allocation7]   ;;  %s2321_s11 = smov [#allocation10]  }
  0x36   :  { %s43_s9 = sshll.u32 %s2320_s8, 4  ;;  %s67_s12 = sshll.u32 %s2321_s11, 4  ;;  %s44_s9 = int_to_ptr.vmem [resolvable:$true] %s43_s9  ;;  %s68_s12 = int_to_ptr.vmem [resolvable:$true] %s67_s12 }
  0x37   :  { %s2239_s15 = scalar_lea.hbm %s2675_s2, 256 }
  0x38   :  { %p2240_p10 = scmp.ne.s32.totalorder %s2675_s2, %s2239_s15  ;;  %p2243_p11 = scmp.lt.u32.totalorder %s2239_s15, %s2675_s2 }
  0x3a   :  { %p2245_p12 = pnand %p2243_p11, %p2240_p10 }
  0x3c   :  { %2248 = shalt.err (!%p2245_p12)
}
  0x3d   :  { %s2249_s0 = scalar_lea.vmem %s44_s9, 256  ;;  %p2254_p0 = scmp.lt.s32.totalorder %s44_s9, %s44_s9 }
  0x3e   :  { %p2250_p13 = scmp.ne.s32.totalorder %s44_s9, %s2249_s0  ;;  %p2255_p1 = scmp.lt.s32.totalorder %s2249_s0, %s2249_s0 }
  0x40   :  { %p2256_p2 = por %p2255_p1, %p2254_p0 }
  0x42   :  { %p2257_p3 = pnand %p2256_p2, %p2250_p13 }
  0x44   :  { %2260 = shalt.err (!%p2257_p3)
}
  0x45   :  { %49 = dma.hbm_to_vmem [thread:$0]  %s2675_s2, 256, %s44_s9, [#allocation6], %s2314_s28, %s2314_s28, %s2315_s29  }
  0x46   :  { %s2261_s22 = scalar_lea.hbm %s2677_s4, 4480 }
  0x47   :  { %p2262_p4 = scmp.ne.s32.totalorder %s2677_s4, %s2261_s22  ;;  %p2265_p5 = scmp.lt.u32.totalorder %s2261_s22, %s2677_s4 }
  0x49   :  { %p2267_p6 = pnand %p2265_p5, %p2262_p4 }
  0x4b   :  { %2270 = shalt.err (!%p2267_p6)
}
  0x4c   :  { %s2271_s27 = scalar_lea.vmem %s68_s12, 4480  ;;  %p2276_p8 = scmp.lt.s32.totalorder %s68_s12, %s68_s12 }
  0x4d   :  { %p2272_p7 = scmp.ne.s32.totalorder %s68_s12, %s2271_s27  ;;  %p2277_p9 = scmp.lt.s32.totalorder %s2271_s27, %s2271_s27 }
  0x4f   :  { %p2278_p10 = por %p2277_p9, %p2276_p8 }
  0x51   :  { %p2279_p11 = pnand %p2278_p10, %p2272_p7 }
  0x53   :  { %2282 = shalt.err (!%p2279_p11)
}
  0x54   :  { %73 = dma.hbm_to_vmem [thread:$0]  %s2677_s4, 4480, %s68_s12, [#allocation9], %s2318_s3, %s2318_s3, %s2319_s30  }
  0x55   :  { %2305 = dma.done.wait [#allocation3], 512  }
  0x56   :  { %2306 = vsyncadd [#allocation3], 4294966784 }
  0x57   :  { %2307 = dma.done.wait [#allocation6], 512  }
  0x58   :  { %2308 = vsyncadd [#allocation6], 4294966784 }
  0x59   :  { %2309 = dma.done.wait [#allocation9], 10624  }
  0x5a   :  { %2310 = vsyncadd [#allocation9], 4294956672  ;;  %v2109_v0 = vld [vmem:[#allocation8 + $0x40] sm:$0xff]   ;;  %v2111_v2 = vld [vmem:[#allocation8 + $0x48] sm:$0xff]   ;;  %v2322_v23 = vmov 0.0|0.0   ;;  %vm2323_vm0 = vmmov 0   ;;  %v160_v47 = vlaneseq }
  0x5b   :  { %v2110_v1 = vld [vmem:[#allocation8] sm:$0xff]   ;;  %1580 = vmatprep.subr.bf16.mxu0 %v2109_v0  ;;  %v2112_v3 = vld [vmem:[#allocation8 + $0x8] sm:$0xff]   ;;  %v2113_v4 = vld [vmem:[#allocation8 + $0x50] sm:$0xff]   ;;  %1986 = vmatprep.subr.bf16.mxu1 %v2322_v23  ;;  %v2324_v45 = vmov 0.0   ;;  %vm1202_vm1 = vcmask 523264   ;;  %vm1268_vm2 = vcmask 261120  }
  0x5c   :  { %1581 = vmatpush3.bf16.msra.mxu0 %v2110_v1  ;;  %v2114_v5 = vld [vmem:[#allocation8 + $0x10] sm:$0xff]   ;;  %v2115_v6 = vld [vmem:[#allocation8 + $0x58] sm:$0xff]   ;;  %v2117_v8 = vld [vmem:[#allocation8 + $0x60] sm:$0xff]   ;;  %1763 = vmatprep.mubr.msk.f32.mxu1 %vm2323_vm0, %v2324_v45  ;;  %v2452_v48 = vshrl.u32 %v160_v47, 7  ;;  %s2325_s4 = smov [#allocation11]  }
  0x5d   :  { %1582 = vmatprep.subr.bf16.mxu0 %v2111_v2  ;;  %v2116_v7 = vld [vmem:[#allocation8 + $0x18] sm:$0xff]   ;;  %v2118_v9 = vld [vmem:[#allocation8 + $0x20] sm:$0xff]   ;;  %v2119_v10 = vld [vmem:[#allocation8 + $0x68] sm:$0xff]  }
  0x5e   :  { %v2127_v11 = vld [vmem:[#allocation2 + $0x4] ss:$8 sps:$4 sm:$0xff]   ;;  %v2121_v13 = vld [vmem:[#allocation8 + $0x70] sm:$0xff]   ;;  %v2123_v15 = vld [vmem:[#allocation8 + $0x78] sm:$0xff]   ;;  %v2455_v50 = vsub.s32 0, %v2452_v48 }
  0x5f   :  { %v2120_v12 = vld [vmem:[#allocation8 + $0x28] sm:$0xff]   ;;  %312 = vmatprep.mubr.bf16.mxu0 %v2127_v11  ;;  %v2122_v14 = vld [vmem:[#allocation8 + $0x30] sm:$0xff]   ;;  %v2124_v16 = vld [vmem:[#allocation8 + $0x38] sm:$0xff]  }
  0x60   :  { %1583 = vmatpush3.bf16.msra.mxu0 %v2112_v3  ;;  %v2125_v17 = vld [vmem:[#allocation2] ss:$8 sps:$4 sm:$0xff]   ;;  %v2128_v18 = vld [vmem:[#allocation2 + $0x14] ss:$8 sps:$4 sm:$0xff]   ;;  %v2130_v19 = vld [vmem:[#allocation2 + $0x10] ss:$8 sps:$4 sm:$0xff]  }
  0x61   :  { %1584 = vmatprep.subr.bf16.mxu0 %v2113_v4  ;;  %v90_v20 = vld [vmem:[#allocation10] sm:$0xff]  ;;  %v91_v21 = vld [vmem:[#allocation10 + $0x8] sm:$0xff]  ;;  %v92_v24 = vld [vmem:[#allocation10 + $0x10] sm:$0xff] }
  0x62   :  { %v1987_v22 = vpack.c.bf16 %v91_v21, %v90_v20  ;;  %v93_v25 = vld [vmem:[#allocation10 + $0x18] sm:$0xff]  ;;  %v94_v27 = vld [vmem:[#allocation10 + $0x20] sm:$0xff]  ;;  %v95_v28 = vld [vmem:[#allocation10 + $0x28] sm:$0xff] }
  0x63   :  { %v1990_v26 = vpack.c.bf16 %v93_v25, %v92_v24  ;;  %v1993_v29 = vpack.c.bf16 %v95_v28, %v94_v27  ;;  %v96_v30 = vld [vmem:[#allocation10 + $0x30] sm:$0xff]  ;;  %v97_v31 = vld [vmem:[#allocation10 + $0x38] sm:$0xff]  ;;  %v98_v33 = vld [vmem:[#allocation10 + $0x40] sm:$0xff] }
  0x64   :  { %1585 = vmatpush3.bf16.msra.mxu0 %v2114_v5  ;;  %1988 = vmatpush3.bf16.msra.mxu1 %v1987_v22  ;;  %v1996_v32 = vpack.c.bf16 %v97_v31, %v96_v30  ;;  %v99_v34 = vld [vmem:[#allocation10 + $0x48] sm:$0xff]  ;;  %v100_v36 = vld [vmem:[#allocation10 + $0x50] sm:$0xff]  ;;  %v101_v37 = vld [vmem:[#allocation10 + $0x58] sm:$0xff] }
  0x65   :  { %1586 = vmatprep.subr.bf16.mxu0 %v2115_v6  ;;  %1989 = vmatprep.subr.bf16.mxu1 %v2322_v23  ;;  %v1999_v35 = vpack.c.bf16 %v99_v34, %v98_v33  ;;  %v2002_v38 = vpack.c.bf16 %v101_v37, %v100_v36  ;;  %v102_v39 = vld [vmem:[#allocation10 + $0x60] sm:$0xff]  ;;  %v103_v40 = vld [vmem:[#allocation10 + $0x68] sm:$0xff]  ;;  %v104_v42 = vld [vmem:[#allocation10 + $0x70] sm:$0xff] }
  0x66   :  { %v2005_v41 = vpack.c.bf16 %v103_v40, %v102_v39  ;;  %v105_v43 = vld [vmem:[#allocation10 + $0x78] sm:$0xff]  ;;  %v2131_v46 = vld [vmem:[#allocation8 + $0xc0] sm:$0xff]   ;;  %v2133_v31 = vld [vmem:[#allocation8 + $0xd0] sm:$0xff]  }
  0x67   :  { %v2008_v44 = vpack.c.bf16 %v105_v43, %v104_v42  ;;  %v2457_v51 = vld [vmem:[#allocation10 + $0x100] sm:$0xff]  ;;  %v2136_v34 = vld [vmem:[#allocation8 + $0xe8] sm:$0xff]   ;;  %v2138_v36 = vld [vmem:[#allocation8 + $0xf8] sm:$0xff]  }
  0x68   :  { %1587 = vmatpush3.bf16.msra.mxu0 %v2116_v7  ;;  %1991 = vmatpush3.bf16.msra.mxu1 %v1990_v26  ;;  %v163_v56 = vrot.slane %v2457_v51, %v2455_v50  ;;  %v2135_v33 = vld [vmem:[#allocation8 + $0xe0] sm:$0xff]   ;;  %v2142_v39 = vld [vmem:[#allocation8 + $0x88] sm:$0xff]   ;;  %v2143_v40 = vld [vmem:[#allocation8 + $0x90] sm:$0xff]  }
  0x69   :  { %1588 = vmatprep.subr.bf16.mxu0 %v2117_v8  ;;  %1992 = vmatprep.subr.bf16.mxu1 %v2322_v23  ;;  %v2140_v37 = vld [vmem:[#allocation8 + $0x80] sm:$0xff]   ;;  %v2146_v43 = vld [vmem:[#allocation8 + $0xa8] sm:$0xff]  }
  0x6a   :  { %v2145_v42 = vld [vmem:[#allocation8 + $0xa0] sm:$0xff]  }
  0x6b   :  { %v106_v47 = vld [vmem:[#allocation10 + $0x80] sm:$0xff] }
  0x6c   :  { %1589 = vmatpush3.bf16.msra.mxu0 %v2118_v9  ;;  %1994 = vmatpush3.bf16.msra.mxu1 %v1993_v29 }
  0x6d   :  { %1590 = vmatprep.subr.bf16.mxu0 %v2119_v10  ;;  %1995 = vmatprep.subr.bf16.mxu1 %v2322_v23 }
  0x70   :  { %1591 = vmatpush3.bf16.msra.mxu0 %v2120_v12  ;;  %1997 = vmatpush3.bf16.msra.mxu1 %v1996_v32 }
  0x71   :  { %1592 = vmatprep.subr.bf16.mxu0 %v2121_v13  ;;  %1998 = vmatprep.subr.bf16.mxu1 %v2322_v23 }
  0x74   :  { %1593 = vmatpush3.bf16.msra.mxu0 %v2122_v14  ;;  %2000 = vmatpush3.bf16.msra.mxu1 %v1999_v35 }
  0x75   :  { %1594 = vmatprep.subr.bf16.mxu0 %v2123_v15  ;;  %2001 = vmatprep.subr.bf16.mxu1 %v2322_v23 }
  0x78   :  { %1595 = vmatpush3.bf16.msra.mxu0 %v2124_v16  ;;  %2003 = vmatpush3.bf16.msra.mxu1 %v2002_v38 }
  0x79   :  { %2010 = vmatprep.subr.bf16.mxu0 %v2322_v23  ;;  %2004 = vmatprep.subr.bf16.mxu1 %v2322_v23 }
  0x7b   :  { %313 = vmatmul.mubr.bf16.vlgmr.msra.gmra.mrb[0].mxu0 %v2125_v17 }
  0x7c   :  { %320 = vmatprep.mubr.bf16.mxu0 %v2128_v18  ;;  %2012 = vmatpush3.bf16.msra.mxu0 %v1987_v22 }
  0x7d   :  { %2013 = vmatprep.subr.bf16.mxu0 %v2322_v23  ;;  %2006 = vmatpush3.bf16.msra.mxu1 %v2005_v41 }
  0x7e   :  { %2007 = vmatprep.subr.bf16.mxu1 %v2322_v23 }
  0x80   :  { %2015 = vmatpush3.bf16.msra.mxu0 %v1990_v26  ;;  %v2139_v26 = vld [vmem:[#allocation5] sm:$0xff]  }
  0x81   :  { %2016 = vmatprep.subr.bf16.mxu0 %v2322_v23  ;;  %2009 = vmatpush3.bf16.msra.mxu1 %v2008_v44 }
  0x82   :  { %1801 = vmatprep.subr.bf16.mxu1 %v2131_v46 }
  0x83   :  { %321 = vmatmul.mubr.bf16.gmra.mrb[4].mxu0 %v2130_v19 }
  0x84   :  { %2018 = vmatpush3.bf16.msra.mxu0 %v1993_v29  ;;  %1798 = vmatprep.mubr.msk.f32.mxu0 %vm2323_vm0, %v2324_v45  ;;  %v2132_v29 = vld [vmem:[#allocation8 + $0xc8] sm:$0xff]  }
  0x85   :  { %2019 = vmatprep.subr.bf16.mxu0 %v2322_v23 }
  0x88   :  { %2021 = vmatpush3.bf16.msra.mxu0 %v1996_v32  ;;  %v2134_v32 = vld [vmem:[#allocation8 + $0xd8] sm:$0xff]  }
  0x89   :  { %2022 = vmatprep.subr.bf16.mxu0 %v2322_v23 }
  0x8c   :  { %2024 = vmatpush3.bf16.msra.mxu0 %v1999_v35  ;;  %v2137_v35 = vld [vmem:[#allocation8 + $0xf0] sm:$0xff]  }
  0x8d   :  { %2025 = vmatprep.subr.bf16.mxu0 %v2322_v23 }
  0x90   :  { %2027 = vmatpush3.bf16.msra.mxu0 %v2002_v38  ;;  %v2141_v38 = vld [vmem:[#allocation5 + $0x8] sm:$0xff]  }
  0x91   :  { %2028 = vmatprep.subr.bf16.mxu0 %v2322_v23 }
  0x94   :  { %2030 = vmatpush3.bf16.msra.mxu0 %v2005_v41  ;;  %v2144_v41 = vld [vmem:[#allocation8 + $0x98] sm:$0xff]  }
  0x95   :  { %2031 = vmatprep.subr.bf16.mxu0 %v2322_v23 }
  0x98   :  { %2033 = vmatpush3.bf16.msra.mxu0 %v2008_v44  ;;  %v2147_v44 = vld [vmem:[#allocation8 + $0xb0] sm:$0xff]  }
  0x99   :  { %2034 = vmatprep.subr.bf16.mxu0 %v2322_v23 }
 0x14e   :  { %v1596_v49 = vpop.f32.mrb[0].mxu0 }
 0x14f   :  { %v1597_v52 = vpop.f32.mrb[1].mxu0 }
 0x150   :  { %v1598_v53 = vadd.f32 %v1597_v52, %v1596_v49  ;;  %v1599_v54 = vpop.f32.mrb[2].mxu0  ;;  %v107_v49 = vld [vmem:[#allocation10 + $0x88] sm:$0xff]  ;;  %v108_v52 = vld [vmem:[#allocation10 + $0x90] sm:$0xff] }
 0x151   :  { %v1600_v55 = vpop.f32.mrb[3].mxu0 }
 0x152   :  { %v1601_v57 = vadd.f32 %v1600_v55, %v1599_v54  ;;  %v2463_v59 = vadd.f32 %v1598_v53, %v163_v56  ;;  %v2483_v53 = vpack.c.bf16 %v107_v49, %v106_v47  ;;  %v109_v54 = vld [vmem:[#allocation10 + $0x98] sm:$0xff]  ;;  %v2529_v49 = vld [vmem:[#allocation8 + $0x100] sm:$0xff]  }
 0x153   :  { %v2486_v55 = vpack.c.bf16 %v109_v54, %v108_v52  ;;  %v2531_v52 = vld [vmem:[#allocation8 + $0x110] sm:$0xff]   ;;  %1064 = vrot.lane.b32.xlu0 %v2529_v49, %s2314_s28  ;;  %v2535_v54 = vld [vmem:[#allocation8 + $0x108] sm:$0xff]  }
 0x154   :  { %v2461_v58 = vadd.f32 %v1601_v57, %v163_v56  ;;  %v340_v2 = vmul.f32 %v2463_v59, %v2463_v59  ;;  %1068 = vrot.lane.b32.xlu1 %v2531_v52, %s2314_s28 }
 0x156   :  { %v1602_v60 = vpop.f32.mrb[4].mxu0  ;;  %v341_v62 = vmul.f32 %v2461_v58, %v2461_v58  ;;  %v329_v3 = vadd.f32 %v2461_v58, %v2463_v59 }
 0x157   :  { %v1603_v61 = vpop.f32.mrb[5].mxu0  ;;  %1066 = vrot.lane.b32.xlu0 %v2535_v54, %s2314_s28 }
 0x158   :  { %v1604_v63 = vadd.f32 %v1603_v61, %v1602_v60  ;;  %v1605_v0 = vpop.f32.mrb[6].mxu0  ;;  %v344_v6 = vadd.f32 %v341_v62, %v340_v2  ;;  %v516_v2 = vsub.s32 1, %v2452_v48 }
 0x159   :  { %v1606_v1 = vpop.f32.mrb[7].mxu0 }
 0x15a   :  { %v2471_v4 = vadd.f32 %v1604_v63, %v163_v56  ;;  %v1607_v5 = vadd.f32 %v1606_v1, %v1605_v0 }
 0x15c   :  { %v330_v7 = vadd.f32 %v329_v3, %v2471_v4  ;;  %v342_v8 = vmul.f32 %v2471_v4, %v2471_v4  ;;  %v2476_v9 = vadd.f32 %v1607_v5, %v163_v56  ;;  %v524_v3 = vsub.s32 2, %v2452_v48 }
 0x15e   :  { %v345_v10 = vadd.f32 %v344_v6, %v342_v8  ;;  %v331_v11 = vadd.f32 %v330_v7, %v2476_v9  ;;  %v343_v12 = vmul.f32 %v2476_v9, %v2476_v9  ;;  %v517_v7 = vrot.slane %v2457_v51, %v516_v2 }
 0x160   :  { %v332_v13 = vrot.slane %v331_v11, 4  ;;  %v346_v14 = vadd.f32 %v345_v10, %v343_v12 }
 0x162   :  { %v347_v15 = vrot.slane %v346_v14, 4  ;;  %v333_v16 = vadd.f32 %v332_v13, %v331_v11  ;;  %v525_v13 = vrot.slane %v2457_v51, %v524_v3 }
 0x164   :  { %v348_v17 = vadd.f32 %v347_v15, %v346_v14  ;;  %v334_v18 = vrot.slane %v333_v16, 2 }
 0x166   :  { %v349_v19 = vrot.slane %v348_v17, 2  ;;  %v335_v20 = vadd.f32 %v334_v18, %v333_v16 }
 0x168   :  { %v350_v21 = vadd.f32 %v349_v19, %v348_v17  ;;  %v336_v22 = vrot.slane %v335_v20, 1 }
 0x16a   :  { %v337_v24 = vadd.f32 %v336_v22, %v335_v20  ;;  %v351_v25 = vrot.slane %v350_v21, 1 }
 0x16c   :  { %v339_v27 = vmul.f32 0.03125, %v337_v24  ;;  %v352_v28 = vadd.f32 %v351_v25, %v350_v21 }
 0x16e   :  { %1764 = vmatmul.mubr.f32.vlgmr.msra.gmra.mrb[0].mxu1 %v339_v27  ;;  %v353_v30 = vmul.f32 0.03125, %v352_v28 }
 0x16f   :  { %1802 = vmatpush3.bf16.msra.mxu1 %v2131_v46  ;;  %1817 = vmatprep.mubr.bf16.mxu1 %v2139_v26  ;;  %v2148_v46 = vld [vmem:[#allocation8 + $0xb8] sm:$0xff]  }
 0x170   :  { %1799 = vmatmul.mubr.f32.vlgmr.msra.gmra.mrb[8].mxu0 %v353_v30  ;;  %1803 = vmatprep.subr.bf16.mxu1 %v2132_v29  ;;  %v111_v30 = vld [vmem:[#allocation10 + $0xa8] sm:$0xff] }
 0x171   :  { %1873 = vmatprep.mubr.msk.f32.mxu0 %vm2323_vm0, %v2324_v45  ;;  %2036 = vmatpush3.bf16.msra.mxu0 %v2483_v53 }
 0x172   :  { %2037 = vmatprep.subr.bf16.mxu0 %v2322_v23 }
 0x173   :  { %1804 = vmatpush3.bf16.msra.mxu1 %v2132_v29  ;;  %v110_v29 = vld [vmem:[#allocation10 + $0xa0] sm:$0xff] }
 0x174   :  { %1805 = vmatprep.subr.bf16.mxu1 %v2133_v31 }
 0x175   :  { %2039 = vmatpush3.bf16.msra.mxu0 %v2486_v55 }
 0x176   :  { %2040 = vmatprep.subr.bf16.mxu0 %v2322_v23 }
 0x177   :  { %1806 = vmatpush3.bf16.msra.mxu1 %v2133_v31  ;;  %v2505_v31 = vpack.c.bf16 %v111_v30, %v110_v29 }
 0x178   :  { %1807 = vmatprep.subr.bf16.mxu1 %v2134_v32 }
 0x179   :  { %2042 = vmatpush3.bf16.msra.mxu0 %v2505_v31 }
 0x17a   :  { %2043 = vmatprep.subr.bf16.mxu0 %v2322_v23 }
 0x17b   :  { %1808 = vmatpush3.bf16.msra.mxu1 %v2134_v32  ;;  %v112_v32 = vld [vmem:[#allocation10 + $0xb0] sm:$0xff] }
 0x17c   :  { %1809 = vmatprep.subr.bf16.mxu1 %v2135_v33 }
 0x17f   :  { %1810 = vmatpush3.bf16.msra.mxu1 %v2135_v33  ;;  %v113_v33 = vld [vmem:[#allocation10 + $0xb8] sm:$0xff] }
 0x180   :  { %1811 = vmatprep.subr.bf16.mxu1 %v2136_v34 }
 0x183   :  { %1812 = vmatpush3.bf16.msra.mxu1 %v2136_v34  ;;  %v2509_v34 = vpack.c.bf16 %v113_v33, %v112_v32 }
 0x184   :  { %1813 = vmatprep.subr.bf16.mxu1 %v2137_v35 }
 0x185   :  { %2045 = vmatpush3.bf16.msra.mxu0 %v2509_v34 }
 0x186   :  { %2046 = vmatprep.subr.bf16.mxu0 %v2322_v23 }
 0x187   :  { %1814 = vmatpush3.bf16.msra.mxu1 %v2137_v35  ;;  %v114_v35 = vld [vmem:[#allocation10 + $0xc0] sm:$0xff] }
 0x188   :  { %1815 = vmatprep.subr.bf16.mxu1 %v2138_v36 }
 0x18b   :  { %1816 = vmatpush3.bf16.msra.mxu1 %v2138_v36  ;;  %v115_v36 = vld [vmem:[#allocation10 + $0xc8] sm:$0xff] }
 0x18c   :  { %1821 = vmatprep.subr.bf16.mxu1 %v2140_v37 }
 0x18e   :  { %1818 = vmatmul.mubr.bf16.vlgmr.msra.gmra.mrb[4].mxu1 %v2141_v38  ;;  %v116_v38 = vld [vmem:[#allocation10 + $0xd0] sm:$0xff] }
 0x18f   :  { %1822 = vmatpush3.bf16.msra.mxu1 %v2140_v37  ;;  %v2513_v37 = vpack.c.bf16 %v115_v36, %v114_v35  ;;  %v2157_v35 = vld [vmem:[#allocation7] sm:$0xff]  }
 0x190   :  { %1823 = vmatprep.subr.bf16.mxu1 %v2142_v39 }
 0x191   :  { %2048 = vmatpush3.bf16.msra.mxu0 %v2513_v37 }
 0x192   :  { %2049 = vmatprep.subr.bf16.mxu0 %v2322_v23 }
 0x193   :  { %1824 = vmatpush3.bf16.msra.mxu1 %v2142_v39  ;;  %v117_v39 = vld [vmem:[#allocation10 + $0xd8] sm:$0xff] }
 0x194   :  { %1825 = vmatprep.subr.bf16.mxu1 %v2143_v40 }
 0x197   :  { %1826 = vmatpush3.bf16.msra.mxu1 %v2143_v40  ;;  %v2517_v40 = vpack.c.bf16 %v117_v39, %v116_v38 }
 0x198   :  { %1827 = vmatprep.subr.bf16.mxu1 %v2144_v41 }
 0x199   :  { %2051 = vmatpush3.bf16.msra.mxu0 %v2517_v40 }
 0x19a   :  { %2052 = vmatprep.subr.bf16.mxu0 %v2322_v23 }
 0x19b   :  { %1828 = vmatpush3.bf16.msra.mxu1 %v2144_v41  ;;  %v118_v41 = vld [vmem:[#allocation10 + $0xe0] sm:$0xff] }
 0x19c   :  { %1829 = vmatprep.subr.bf16.mxu1 %v2145_v42 }
 0x19f   :  { %1830 = vmatpush3.bf16.msra.mxu1 %v2145_v42  ;;  %v119_v42 = vld [vmem:[#allocation10 + $0xe8] sm:$0xff] }
 0x1a0   :  { %1831 = vmatprep.subr.bf16.mxu1 %v2146_v43 }
 0x1a3   :  { %1832 = vmatpush3.bf16.msra.mxu1 %v2146_v43  ;;  %v2521_v43 = vpack.c.bf16 %v119_v42, %v118_v41  ;;  %v2158_v41 = vld [vmem:[#allocation7 + $0x8] sm:$0xff]  }
 0x1a4   :  { %1833 = vmatprep.subr.bf16.mxu1 %v2147_v44 }
 0x1a5   :  { %2054 = vmatpush3.bf16.msra.mxu0 %v2521_v43 }
 0x1a6   :  { %2055 = vmatprep.subr.bf16.mxu0 %v2322_v23 }
 0x1a7   :  { %1834 = vmatpush3.bf16.msra.mxu1 %v2147_v44  ;;  %v120_v44 = vld [vmem:[#allocation10 + $0xf0] sm:$0xff] }
 0x1a8   :  { %1835 = vmatprep.subr.bf16.mxu1 %v2148_v46 }
 0x1ab   :  { %1836 = vmatpush3.bf16.msra.mxu1 %v2148_v46  ;;  %v121_v46 = vld [vmem:[#allocation10 + $0xf8] sm:$0xff] }
 0x1ac   :  { %v2524_v47 = vpack.c.bf16 %v121_v46, %v120_v44 }
 0x1ae   :  { %2057 = vmatpush3.bf16.msra.mxu0 %v2524_v47 }
 0x1af   :  { %2058 = vmatprep.subr.bf16.mxu0 %v2322_v23 }
 0x1c5   :  { %v1065_v30 = vpop.permute.xlu0 %1064 }
 0x1c6   :  { %1911 = vmatprep.subr.bf16.mxu1 %v1065_v30 }
 0x241   :  { %v420_v56 = vpop.f32.mrb[0].mxu1 }
 0x242   :  { %v494_v57 = vmul.f32 %v420_v56, %v420_v56  ;;  %v1765_v60 = vpop.f32.mrb[1].mxu1  ;;  %v499_v1 = vrot.slane %v420_v56, %v2455_v50  ;;  %v2539_v56 = vld [vmem:[#allocation8 + $0x118] sm:$0xff]  }
 0x243   :  { %v490_v61 = vpop.f32.mrb[8].mxu0  ;;  %1070 = vrot.lane.b32.xlu1 %v2539_v56, %s2314_s28  ;;  %v2547_v60 = vld [vmem:[#allocation8 + $0x128] sm:$0xff]  }
 0x244   :  { %v1800_v62 = vpop.f32.mrb[9].mxu0  ;;  %v495_v63 = vsub.f32 %v490_v61, %v494_v57  ;;  %v500_v6 = vsub.f32 %v2463_v59, %v499_v1  ;;  %v501_v8 = vsub.f32 %v2461_v58, %v499_v1  ;;  %v502_v10 = vsub.f32 %v2471_v4, %v499_v1  ;;  %v2545_v57 = vld [vmem:[#allocation8 + $0x120] sm:$0xff]   ;;  %v2553_v61 = vld [vmem:[#allocation8 + $0x130] sm:$0xff]  }
 0x245   :  { %v503_v11 = vsub.f32 %v2476_v9, %v499_v1  ;;  %1072 = vrot.lane.b32.xlu0 %v2545_v57, %s2314_s28  ;;  %v2555_v62 = vld [vmem:[#allocation8 + $0x138] sm:$0xff]  }
 0x246   :  { %v504_v0 = vadd.f32 1e-05, %v495_v63  ;;  %v780_v63 = vsub.s32 3, %v2452_v48 }
 0x247   :  { %1074 = vrot.lane.b32.xlu1 %v2547_v60, %s2314_s28 }
 0x248   :  { %2167 = vrsqrt.f32 %v504_v0  ;;  %v781_v1 = vrot.slane %v2457_v51, %v780_v63 }
 0x249   :  { %1076 = vrot.lane.b32.xlu0 %v2553_v61, %s2314_s28 }
 0x24b   :  { %1078 = vrot.lane.b32.xlu1 %v2555_v62, %s2314_s28  ;;  %s1510_s28 = sshll.u32 %s2325_s4, 4  ;;  %s1511_s28 = int_to_ptr.vmem [resolvable:$true] %s1510_s28 }
 0x24c   :  { %s2283_s3 = scalar_lea.vmem %s1511_s28, 64  ;;  %p2288_p13 = scmp.lt.s32.totalorder %s1511_s28, %s1511_s28 }
 0x24d   :  { %p2284_p12 = scmp.ne.s32.totalorder %s1511_s28, %s2283_s3  ;;  %p2289_p0 = scmp.lt.s32.totalorder %s2283_s3, %s2283_s3 }
 0x24f   :  { %p2290_p1 = por %p2289_p0, %p2288_p13 }
 0x251   :  { %p2291_p2 = pnand %p2290_p1, %p2284_p12 }
 0x252   :  { %v2168_v5 = vpop.eup %2167 }
 0x253   :  { %v509_v12 = vrot.slane %v2168_v5, %v2455_v50 }
 0x255   :  { %v510_v14 = vmul.f32 %v509_v12, %v500_v6  ;;  %v511_v15 = vmul.f32 %v509_v12, %v501_v8  ;;  %v512_v16 = vmul.f32 %v509_v12, %v502_v10  ;;  %v513_v59 = vmul.f32 %v509_v12, %v503_v11 }
 0x257   :  { %v518_v17 = vmul.f32 %v517_v7, %v510_v14  ;;  %v519_v18 = vmul.f32 %v517_v7, %v511_v15  ;;  %v520_v19 = vmul.f32 %v517_v7, %v512_v16  ;;  %v521_v20 = vmul.f32 %v517_v7, %v513_v59 }
 0x259   :  { %v526_v21 = vadd.f32 %v525_v13, %v518_v17  ;;  %v527_v58 = vadd.f32 %v525_v13, %v519_v18  ;;  %v528_v22 = vadd.f32 %v525_v13, %v520_v19  ;;  %v529_v4 = vadd.f32 %v525_v13, %v521_v20 }
 0x25b   :  { %v530_v24 = vmax.f32 %v526_v21, 0.0  ;;  %v531_v9 = vmax.f32 %v527_v58, 0.0  ;;  %v532_v25 = vmax.f32 %v528_v22, 0.0  ;;  %v533_v26 = vmax.f32 %v529_v4, 0.0 }
 0x25d   :  { %v534_v27 = vpack.c.bf16 %v531_v9, %v530_v24  ;;  %v535_v28 = vpack.c.bf16 %v533_v26, %v532_v25 }
 0x25f   :  { %1837 = vmatprep.mubr.bf16.mxu1 %v534_v27 }
 0x260   :  { %1838 = vmatmul.mubr.bf16.vlgmr.msra.gmra.mrb[4].mxu1 %v535_v28 }
 0x261   :  { %1912 = vmatpush3.bf16.msra.mxu1 %v1065_v30  ;;  %1927 = vmatprep.mubr.bf16.mxu1 %v2157_v35 }
 0x333   :  { %v1839_v0 = vpop.f32.mrb[4].mxu1 }
 0x334   :  { %v763_v5 = vpop.f32.mrb[5].mxu1  ;;  %v2567_v11 = vadd.f32 %v1839_v0, %v781_v1 }
 0x335   :  { %v1840_v6 = vpop.f32.mrb[6].mxu1  ;;  %v2563_v8 = vadd.f32 %v781_v1, %v763_v5 }
 0x336   :  { %v766_v7 = vpop.f32.mrb[7].mxu1  ;;  %v2571_v13 = vadd.f32 %v1840_v6, %v781_v1  ;;  %v798_v22 = vmul.f32 %v2567_v11, %v2567_v11 }
 0x337   :  { %v2565_v10 = vadd.f32 %v781_v1, %v766_v7  ;;  %v796_v19 = vmul.f32 %v2563_v8, %v2563_v8 }
 0x338   :  { %v799_v25 = vmul.f32 %v2571_v13, %v2571_v13 }
 0x339   :  { %v786_v12 = vadd.f32 %v2565_v10, %v2563_v8  ;;  %v797_v17 = vmul.f32 %v2565_v10, %v2565_v10 }
 0x33b   :  { %v787_v14 = vadd.f32 %v786_v12, %v2567_v11  ;;  %v800_v21 = vadd.f32 %v797_v17, %v796_v19 }
 0x33d   :  { %v788_v15 = vadd.f32 %v787_v14, %v2571_v13  ;;  %v801_v24 = vadd.f32 %v800_v21, %v798_v22 }
 0x33f   :  { %v789_v16 = vrot.slane %v788_v15, 4  ;;  %v802_v26 = vadd.f32 %v801_v24, %v799_v25  ;;  %v2159_v24 = vld [vmem:[#allocation8 + $0x140] sm:$0xff]   ;;  %v2161_v25 = vld [vmem:[#allocation8 + $0x150] sm:$0xff]  }
 0x341   :  { %v790_v59 = vadd.f32 %v789_v16, %v788_v15  ;;  %v803_v27 = vrot.slane %v802_v26, 4 }
 0x343   :  { %v791_v18 = vrot.slane %v790_v59, 2  ;;  %v804_v28 = vadd.f32 %v803_v27, %v802_v26  ;;  %v1196_v26 = vsub.s32 6, %v2452_v48 }
 0x345   :  { %v792_v20 = vadd.f32 %v791_v18, %v790_v59  ;;  %v1197_v27 = vrot.slane %v2457_v51, %v1196_v26 }
 0x347   :  { %v793_v58 = vrot.slane %v792_v20, 1 }
 0x349   :  { %v794_v4 = vadd.f32 %v793_v58, %v792_v20 }
 0x34b   :  { %v795_v9 = vmul.f32 0.03125, %v794_v4 }
 0x34d   :  { %1874 = vmatmul.mubr.f32.vlgmr.msra.gmra.mrb[10].mxu0 %v795_v9  ;;  %v2160_v9 = vld [vmem:[#allocation8 + $0x148] sm:$0xff]  }
 0x34e   :  { %2060 = vmatpush3.bf16.msra.mxu0 %v2483_v53  ;;  %1908 = vmatprep.mubr.msk.f32.mxu0 %vm2323_vm0, %v2324_v45  ;;  %v805_v53 = vrot.slane %v804_v28, 2 }
 0x34f   :  { %2061 = vmatprep.subr.bf16.mxu0 %v2322_v23 }
 0x350   :  { %v806_v29 = vadd.f32 %v805_v53, %v804_v28 }
 0x352   :  { %2063 = vmatpush3.bf16.msra.mxu0 %v2486_v55  ;;  %v807_v55 = vrot.slane %v806_v29, 1 }
 0x353   :  { %2064 = vmatprep.subr.bf16.mxu0 %v2322_v23 }
 0x354   :  { %v808_v32 = vadd.f32 %v807_v55, %v806_v29 }
 0x356   :  { %2066 = vmatpush3.bf16.msra.mxu0 %v2505_v31  ;;  %v1067_v31 = vpop.permute.xlu0 %1066  ;;  %v809_v33 = vmul.f32 0.03125, %v808_v32 }
 0x357   :  { %2067 = vmatprep.subr.bf16.mxu0 %v2322_v23  ;;  %1913 = vmatprep.subr.bf16.mxu1 %v1067_v31 }
 0x358   :  { %1914 = vmatpush3.bf16.msra.mxu1 %v1067_v31 }
 0x35a   :  { %2069 = vmatpush3.bf16.msra.mxu0 %v2509_v34  ;;  %v1069_v34 = vpop.permute.xlu1 %1068 }
 0x35b   :  { %2070 = vmatprep.subr.bf16.mxu0 %v2322_v23  ;;  %1915 = vmatprep.subr.bf16.mxu1 %v1069_v34 }
 0x35c   :  { %1916 = vmatpush3.bf16.msra.mxu1 %v1069_v34 }
 0x35e   :  { %2072 = vmatpush3.bf16.msra.mxu0 %v2513_v37  ;;  %v1071_v36 = vpop.permute.xlu1 %1070  ;;  %v1073_v37 = vpop.permute.xlu0 %1072 }
 0x35f   :  { %2073 = vmatprep.subr.bf16.mxu0 %v2322_v23  ;;  %1917 = vmatprep.subr.bf16.mxu1 %v1071_v36 }
 0x360   :  { %1918 = vmatpush3.bf16.msra.mxu1 %v1071_v36 }
 0x361   :  { %1919 = vmatprep.subr.bf16.mxu1 %v1073_v37 }
 0x362   :  { %2075 = vmatpush3.bf16.msra.mxu0 %v2517_v40  ;;  %v1075_v38 = vpop.permute.xlu1 %1074  ;;  %v1077_v39 = vpop.permute.xlu0 %1076 }
 0x363   :  { %2076 = vmatprep.subr.bf16.mxu0 %v2322_v23 }
 0x364   :  { %1920 = vmatpush3.bf16.msra.mxu1 %v1073_v37 }
 0x365   :  { %1921 = vmatprep.subr.bf16.mxu1 %v1075_v38 }
 0x366   :  { %2078 = vmatpush3.bf16.msra.mxu0 %v2521_v43  ;;  %v1079_v40 = vpop.permute.xlu1 %1078 }
 0x367   :  { %2079 = vmatprep.subr.bf16.mxu0 %v2322_v23 }
 0x368   :  { %1922 = vmatpush3.bf16.msra.mxu1 %v1075_v38 }
 0x369   :  { %1923 = vmatprep.subr.bf16.mxu1 %v1077_v39 }
 0x36a   :  { %2081 = vmatpush3.bf16.msra.mxu0 %v2524_v47 }
 0x36b   :  { %1962 = vmatprep.subr.bf16.mxu0 %v2324_v45 }
 0x36c   :  { %1924 = vmatpush3.bf16.msra.mxu1 %v1077_v39 }
 0x36d   :  { %1909 = vmatmul.mubr.f32.vlgmr.msra.gmra.mrb[12].mxu0 %v809_v33  ;;  %1925 = vmatprep.subr.bf16.mxu1 %v1079_v40 }
 0x36e   :  { %1970 = vmatprep.mubr.msk.bf16.mxu0 %vm2323_vm0, %v2324_v45  ;;  %1963 = vmatpush3.bf16.msra.mxu0 %v2159_v24 }
 0x36f   :  { %1964 = vmatprep.subr.bf16.mxu0 %v2324_v45 }
 0x370   :  { %1926 = vmatpush3.bf16.msra.mxu1 %v1079_v40 }
 0x371   :  { %1931 = vmatprep.subr.bf16.mxu1 %v2529_v49 }
 0x372   :  { %1965 = vmatpush3.bf16.msra.mxu0 %v2160_v9 }
 0x373   :  { %1928 = vmatmul.mubr.bf16.vlgmr.msra.gmra.mrb[8].mxu1 %v2158_v41  ;;  %1966 = vmatprep.subr.bf16.mxu0 %v2324_v45 }
 0x374   :  { %1932 = vmatpush3.bf16.msra.mxu1 %v2529_v49 }
 0x375   :  { %1933 = vmatprep.subr.bf16.mxu1 %v2535_v54 }
 0x376   :  { %1967 = vmatpush3.bf16.msra.mxu0 %v2161_v25 }
 0x377   :  { %1968 = vmatprep.subr.bf16.mxu0 %v2324_v45 }
 0x378   :  { %1934 = vmatpush3.bf16.msra.mxu1 %v2535_v54 }
 0x379   :  { %1935 = vmatprep.subr.bf16.mxu1 %v2531_v52 }
 0x37c   :  { %1936 = vmatpush3.bf16.msra.mxu1 %v2531_v52 }
 0x37d   :  { %1937 = vmatprep.subr.bf16.mxu1 %v2539_v56 }
 0x380   :  { %1938 = vmatpush3.bf16.msra.mxu1 %v2539_v56  ;;  %v972_v56 = vsub.s32 4, %v2452_v48 }
 0x381   :  { %1939 = vmatprep.subr.bf16.mxu1 %v2545_v57 }
 0x384   :  { %1940 = vmatpush3.bf16.msra.mxu1 %v2545_v57  ;;  %v980_v57 = vsub.s32 5, %v2452_v48 }
 0x385   :  { %1941 = vmatprep.subr.bf16.mxu1 %v2547_v60 }
 0x386   :  { %v981_v6 = vrot.slane %v2457_v51, %v980_v57 }
 0x388   :  { %1942 = vmatpush3.bf16.msra.mxu1 %v2547_v60 }
 0x389   :  { %1943 = vmatprep.subr.bf16.mxu1 %v2553_v61 }
 0x38c   :  { %1944 = vmatpush3.bf16.msra.mxu1 %v2553_v61 }
 0x38d   :  { %1945 = vmatprep.subr.bf16.mxu1 %v2555_v62 }
 0x390   :  { %1946 = vmatpush3.bf16.msra.mxu1 %v2555_v62  ;;  %v973_v62 = vrot.slane %v2457_v51, %v972_v56 }
 0x391   :  { %2082 = vmatprep.subr.bf16.mxu1 %v2322_v23 }
 0x420   :  { %v876_v42 = vpop.f32.mrb[10].mxu0 }
 0x421   :  { %v1875_v43 = vpop.f32.mrb[11].mxu0  ;;  %v950_v44 = vmul.f32 %v876_v42, %v876_v42  ;;  %v955_v54 = vrot.slane %v876_v42, %v2455_v50 }
 0x423   :  { %v956_v61 = vsub.f32 %v2563_v8, %v955_v54  ;;  %v957_v63 = vsub.f32 %v2565_v10, %v955_v54  ;;  %v958_v0 = vsub.f32 %v2567_v11, %v955_v54  ;;  %v959_v1 = vsub.f32 %v2571_v13, %v955_v54 }
 0x440   :  { %v946_v46 = vpop.f32.mrb[12].mxu0 }
 0x441   :  { %v951_v47 = vsub.f32 %v946_v46, %v950_v44  ;;  %v1910_v49 = vpop.f32.mrb[13].mxu0 }
 0x443   :  { %v960_v52 = vadd.f32 1e-05, %v951_v47 }
 0x445   :  { %2169 = vrsqrt.f32 %v960_v52 }
 0x44f   :  { %v2170_v60 = vpop.eup %2169 }
 0x450   :  { %v965_v5 = vrot.slane %v2170_v60, %v2455_v50 }
 0x452   :  { %v966_v7 = vmul.f32 %v965_v5, %v956_v61  ;;  %v967_v12 = vmul.f32 %v965_v5, %v957_v63  ;;  %v968_v14 = vmul.f32 %v965_v5, %v958_v0  ;;  %v969_v15 = vmul.f32 %v965_v5, %v959_v1 }
 0x454   :  { %v974_v16 = vmul.f32 %v973_v62, %v966_v7  ;;  %v975_v59 = vmul.f32 %v973_v62, %v967_v12  ;;  %v976_v17 = vmul.f32 %v973_v62, %v968_v14  ;;  %v977_v8 = vmul.f32 %v973_v62, %v969_v15 }
 0x456   :  { %v982_v18 = vadd.f32 %v981_v6, %v974_v16  ;;  %v983_v19 = vadd.f32 %v981_v6, %v975_v59  ;;  %v984_v20 = vadd.f32 %v981_v6, %v976_v17  ;;  %v985_v10 = vadd.f32 %v981_v6, %v977_v8 }
 0x458   :  { %v986_v21 = vmax.f32 %v982_v18, 0.0  ;;  %v987_v11 = vmax.f32 %v983_v19, 0.0  ;;  %v988_v58 = vmax.f32 %v984_v20, 0.0  ;;  %v989_v13 = vmax.f32 %v985_v10, 0.0 }
 0x45a   :  { %v990_v22 = vpack.c.bf16 %v987_v11, %v986_v21  ;;  %v991_v4 = vpack.c.bf16 %v989_v13, %v988_v58  ;;  %v1249_v11 = vsub.s32 7, %v2452_v48  ;;  %v123_v58 = vld [vmem:[#allocation10 + $0x108] sm:$0xff] }
 0x45c   :  { %1947 = vmatprep.mubr.bf16.mxu1 %v990_v22  ;;  %v1250_v13 = vrot.slane %v2457_v51, %v1249_v11 }
 0x45d   :  { %1948 = vmatmul.mubr.bf16.vlgmr.msra.gmra.mrb[8].mxu1 %v991_v4  ;;  %v1258_v4 = vrot.slane %v123_v58, %v2455_v50  ;;  %v1267_v50 = vld [vmem:[#allocation10 + $0x110] sm:$0xf] }
 0x45e   :  { %1959 = vmatprep.mubr.msk.f32.mxu1 %vm2323_vm0, %v2324_v45 }
 0x530   :  { %v1949_v28 = vpop.f32.mrb[8].mxu1 }
 0x531   :  { %v1179_v53 = vpop.f32.mrb[9].mxu1  ;;  %v1200_v29 = vadd.f32 %v1949_v28, %v1197_v27 }
 0x532   :  { %v1198_v30 = vadd.f32 %v1197_v27, %v1179_v53  ;;  %v1950_v55 = vpop.f32.mrb[10].mxu1 }
 0x533   :  { %v1182_v31 = vpop.f32.mrb[11].mxu1  ;;  %v1201_v33 = vadd.f32 %v1950_v55, %v1197_v27  ;;  %v1219_v35 = vmul.f32 %v1200_v29, %v1200_v29  ;;  %v1206_v40 = vsel %vm1202_vm1, %v1200_v29, 0.0 }
 0x534   :  { %v1217_v32 = vmul.f32 %v1198_v30, %v1198_v30  ;;  %v1199_v34 = vadd.f32 %v1197_v27, %v1182_v31  ;;  %v1203_v36 = vsel %vm1202_vm1, %v1198_v30, 0.0 }
 0x535   :  { %v1220_v42 = vmul.f32 %v1201_v33, %v1201_v33  ;;  %v1224_v47 = vsel %vm1202_vm1, %v1219_v35, 0.0  ;;  %v1208_v49 = vsel %vm1202_vm1, %v1201_v33, 0.0 }
 0x536   :  { %v1204_v37 = vsel %vm1202_vm1, %v1199_v34, 0.0  ;;  %v1218_v38 = vmul.f32 %v1199_v34, %v1199_v34  ;;  %v1221_v41 = vsel %vm1202_vm1, %v1217_v32, 0.0 }
 0x537   :  { %v1205_v39 = vadd.f32 %v1204_v37, %v1203_v36  ;;  %v1226_v56 = vsel %vm1202_vm1, %v1220_v42, 0.0 }
 0x538   :  { %v1222_v43 = vsel %vm1202_vm1, %v1218_v38, 0.0  ;;  %v2162_v38 = vld [vmem:[#allocation8 + $0x158] sm:$0xff]  }
 0x539   :  { %v1207_v44 = vadd.f32 %v1206_v40, %v1205_v39  ;;  %v1223_v46 = vadd.f32 %v1222_v43, %v1221_v41  ;;  %1969 = vmatpush3.bf16.msra.mxu0 %v2162_v38  ;;  %v2163_v40 = vld [vmem:[#allocation8 + $0x160] sm:$0xff]   ;;  %v2164_v43 = vld [vmem:[#allocation8 + $0x168] sm:$0xff]  }
 0x53a   :  { %1974 = vmatprep.subr.bf16.mxu0 %v2324_v45 }
 0x53b   :  { %v1209_v52 = vadd.f32 %v1208_v49, %v1207_v44  ;;  %v1225_v54 = vadd.f32 %v1224_v47, %v1223_v46  ;;  %v2166_v44 = vld [vmem:[#allocation8 + $0x178] sm:$0xff]   ;;  %v1354_v46 = vrot.slane %v123_v58, %v516_v2 }
 0x53d   :  { %v1210_v57 = vrot.slane %v1209_v52, 4  ;;  %v1227_v60 = vadd.f32 %v1226_v56, %v1225_v54 }
 0x53f   :  { %v1211_v61 = vadd.f32 %v1210_v57, %v1209_v52  ;;  %v1228_v62 = vrot.slane %v1227_v60, 4 }
 0x541   :  { %v1212_v63 = vrot.slane %v1211_v61, 2  ;;  %v1229_v0 = vadd.f32 %v1228_v62, %v1227_v60 }
 0x543   :  { %v1213_v1 = vadd.f32 %v1212_v63, %v1211_v61  ;;  %v1230_v5 = vrot.slane %v1229_v0, 2  ;;  %v1435_v61 = vrot.slane %v123_v58, %v524_v3 }
 0x545   :  { %v1214_v6 = vrot.slane %v1213_v1, 1  ;;  %v1231_v7 = vadd.f32 %v1230_v5, %v1229_v0 }
 0x547   :  { %v1215_v12 = vadd.f32 %v1214_v6, %v1213_v1  ;;  %v1232_v14 = vrot.slane %v1231_v7, 1 }
 0x549   :  { %v1216_v15 = vmul.f32 0.03125, %v1215_v12  ;;  %v1233_v16 = vadd.f32 %v1232_v14, %v1231_v7 }
 0x54b   :  { %v1234_v59 = vmul.f32 0.03125, %v1233_v16  ;;  %v1235_v17 = vmul.f32 %v1216_v15, %v1216_v15  ;;  %v1238_v8 = vsub.f32 %v1199_v34, %v1216_v15  ;;  %v1237_v18 = vsub.f32 %v1198_v30, %v1216_v15 }
 0x54c   :  { %v1239_v19 = vsub.f32 %v1200_v29, %v1216_v15  ;;  %v1240_v20 = vsub.f32 %v1201_v33, %v1216_v15 }
 0x54d   :  { %v1236_v10 = vsub.f32 %v1234_v59, %v1235_v17 }
 0x54f   :  { %v1241_v21 = vadd.f32 1e-05, %v1236_v10 }
 0x551   :  { %2171 = vrsqrt.f32 %v1241_v21 }
 0x55b   :  { %v2172_v22 = vpop.eup %2171 }
 0x55c   :  { %v1244_v24 = vmul.f32 %v2172_v22, %v1238_v8  ;;  %v1243_v9 = vmul.f32 %v2172_v22, %v1237_v18  ;;  %v1245_v25 = vmul.f32 %v2172_v22, %v1239_v19  ;;  %v1246_v26 = vmul.f32 %v2172_v22, %v1240_v20 }
 0x55e   :  { %v1252_v27 = vmul.f32 %v1250_v13, %v1244_v24  ;;  %v1251_v28 = vmul.f32 %v1250_v13, %v1243_v9  ;;  %v1253_v53 = vmul.f32 %v1250_v13, %v1245_v25  ;;  %v1254_v29 = vmul.f32 %v1250_v13, %v1246_v26 }
 0x560   :  { %v1259_v30 = vadd.f32 %v1258_v4, %v1251_v28  ;;  %v1260_v55 = vadd.f32 %v1258_v4, %v1252_v27  ;;  %v1261_v31 = vadd.f32 %v1258_v4, %v1253_v53  ;;  %v1262_v32 = vadd.f32 %v1258_v4, %v1254_v29 }
 0x562   :  { %v1263_v33 = vmax.f32 %v1259_v30, 0.0  ;;  %v1264_v34 = vmax.f32 %v1260_v55, 0.0  ;;  %v1265_v35 = vmax.f32 %v1261_v31, 0.0  ;;  %v1266_v36 = vmax.f32 %v1262_v32, 0.0 }
 0x564   :  { %v2083_v51 = vpack.c.bf16 %v1264_v34, %v1263_v33  ;;  %v2086_v37 = vpack.c.bf16 %v1266_v36, %v1265_v35 }
 0x566   :  { %2084 = vmatpush3.bf16.msra.mxu1 %v2083_v51 }
 0x567   :  { %2085 = vmatprep.subr.bf16.mxu1 %v2322_v23  ;;  %v2165_v23 = vld [vmem:[#allocation8 + $0x170] sm:$0xff]  }
 0x56a   :  { %2087 = vmatpush3.bf16.msra.mxu1 %v2086_v37 }
 0x56d   :  { %1960 = vmatmul.mubr.msk.f32.vlgmr.msra.gmra.mrb[2].mxu1 %vm1268_vm2, %v1267_v50 }
 0x640   :  { %v1338_v39 = vpop.f32.mrb[2].mxu1 }
 0x641   :  { %v1342_v41 = vpack.c.bf16 %v1338_v39, %v1338_v39  ;;  %v1961_v42 = vpop.f32.mrb[3].mxu1 }
 0x643   :  { %1971 = vmatmul.mubr.msk.bf16.vlgmr.msra.gmra.mrb[16].mxu0 %vm1202_vm1, %v1342_v41 }
 0x644   :  { %1975 = vmatpush3.bf16.msra.mxu0 %v2163_v40  ;;  %1982 = vmatprep.mubr.msk.bf16.mxu0 %vm2323_vm0, %v2324_v45 }
 0x645   :  { %1976 = vmatprep.subr.bf16.mxu0 %v2324_v45 }
 0x648   :  { %1977 = vmatpush3.bf16.msra.mxu0 %v2164_v43 }
 0x649   :  { %1978 = vmatprep.subr.bf16.mxu0 %v2324_v45 }
 0x64c   :  { %1979 = vmatpush3.bf16.msra.mxu0 %v2165_v23 }
 0x64d   :  { %1980 = vmatprep.subr.bf16.mxu0 %v2324_v45 }
 0x650   :  { %1981 = vmatpush3.bf16.msra.mxu0 %v2166_v44 }
 0x716   :  { %v1416_v47 = vpop.f32.mrb[16].mxu0 }
 0x717   :  { %v1417_v49 = vadd.f32 %v1416_v47, %v1354_v46  ;;  %v1972_v52 = vpop.f32.mrb[17].mxu0 }
 0x718   :  { %v1419_v54 = vpop.f32.mrb[18].mxu0 }
 0x719   :  { %v1422_v56 = vmax.f32 %v1417_v49, 0.0  ;;  %v1973_v57 = vpop.f32.mrb[19].mxu0 }
 0x71b   :  { %v1423_v60 = vpack.c.bf16 %v1422_v56, %v1422_v56 }
 0x71d   :  { %1983 = vmatmul.mubr.msk.bf16.vlgmr.msra.gmra.mrb[20].mxu0 %vm1202_vm1, %v1423_v60 }
 0x7f0   :  { %v1497_v45 = vpop.f32.mrb[20].mxu0 }
 0x7f1   :  { %v1498_v62 = vadd.f32 %v1497_v45, %v1435_v61  ;;  %v1984_v63 = vpop.f32.mrb[21].mxu0 }
 0x7f2   :  { %v1500_v0 = vpop.f32.mrb[22].mxu0 }
 0x7f3   :  { %1503 = vst [vmem:[#allocation11] sm:$0xf] %v1498_v62  ;;  %v1985_v2 = vpop.f32.mrb[23].mxu0 }
 0x7f4   :  { %2294 = shalt.err (!%p2291_p2)
}
 0x7f5   :  { %s2295_s7 = scalar_lea.hbm %s2678_s5, 64 }
 0x7f6   :  { %p2296_p3 = scmp.ne.s32.totalorder %s2678_s5, %s2295_s7  ;;  %p2299_p4 = scmp.lt.u32.totalorder %s2295_s7, %s2678_s5 }
 0x7f8   :  { %p2301_p5 = pnand %p2299_p4, %p2296_p3 }
 0x7fa   :  { %2304 = shalt.err (!%p2301_p5)
}
 0x7fb   :  { %1513 = dma.vmem_to_hbm [thread:$0]  %s1511_s28, 64, %s2678_s5, [#allocation4]  }
 0x7fc   :  { %2311 = dma.done.wait [#allocation4], 64  }
 0x7fd   :  { %2312 = vsyncadd [#allocation4], 4294967232 }
 0x7fe   :  { %1517 = vsyncpa [#allocation3], 1 }
 0x7ff   :  { %1518 = vsyncpa [#allocation6], 1 }
 0x800   :  { %1519 = vsyncpa [#allocation9], 1 }
 0x801   :  { %1520 = vsyncpa [#allocation4], 1 }

</bundles_post_ra>
